<compile_context>
chip_gen: v7x
topology: tpu7x:2x2x1
jax: 0.10.0
libtpu: 0.0.40
codegen_flags: <defaults>
</compile_context>

<pallas_src>
import functools

import jax
import jax.numpy as jnp
from jax.experimental import pallas as pl
from jax.experimental.pallas import tpu as pltpu


def _conv3x3_kernel(x_ref, w_ref, b_ref, o_ref, lhs_ref, *, Nb, H, K1, WCout):
    """One grid step: 3x3 conv (padding=1) for Nb images as ONE MXU matmul.

    x_ref  : (Nb, H, W*Cin)     bf16  NHWC block, (W, Cin) fused on lanes
    w_ref  : (3*W*Cin, W*Cout)  bf16  fused block-banded weights (resident)
    b_ref  : (1, W*Cout)        f32   bias tiled over W positions
    o_ref  : (Nb, H, W*Cout)    bf16  lane-dense output
    lhs_ref: (Nb, H, 3*W*Cin)   bf16  VMEM scratch: K-fused LHS
    """
    zrow = jnp.zeros((Nb, 1, K1), jnp.bfloat16)

    # dy = 1 (center row tap): aligned full copy.
    lhs_ref[:, :, K1:2 * K1] = x_ref[...]
    # dy = 0 (row above): output row h reads input row h-1; row 0 is zero pad.
    lhs_ref[:, 0:1, 0:K1] = zrow
    lhs_ref[:, 1:H, 0:K1] = x_ref[:, 0:H - 1, :]
    # dy = 2 (row below): output row h reads input row h+1; row H-1 is zero pad.
    lhs_ref[:, 0:H - 1, 2 * K1:3 * K1] = x_ref[:, 1:H, :]
    lhs_ref[:, H - 1:H, 2 * K1:3 * K1] = zrow

    M = Nb * H
    # Single deep-K MXU push (K = 3*W*Cin), f32 accumulate; accumulator is the
    # dot result itself (no zeros + add).
    acc = jnp.dot(lhs_ref[...].reshape(M, 3 * K1), w_ref[...],
                  preferred_element_type=jnp.float32)
    acc = acc + b_ref[...]          # elementwise kept in f32 (v5e VPU: no bf16)
    o_ref[...] = acc.reshape(Nb, H, WCout).astype(o_ref.dtype)


def _banded_weights_fused(w_hwio, W):
    """(3, 3, Cin, Cout) HWIO -> (3*W*Cin, W*Cout) fused block-banded weights.

    Built on UNPADDED column coordinates:
      wb[dy*W*Cin + iw*Cin + ci, ow*Cout + co] = w_hwio[dy, iw-ow+1, ci, co]
      if |iw - ow| <= 1 else 0,
    so the W-direction padding=1 is realized entirely by the band mask (no
    padded input lanes, no wrapper jnp.pad).  In a real layer this is computed
    ONCE at module init and cached; it only depends on the weights and W.
    """
    _, _, Cin, Cout = w_hwio.shape
    iw = jnp.arange(W)[:, None]                 # input  column
    ow = jnp.arange(W)[None, :]                 # output column
    dx = iw - ow + 1                            # tap index in [0, 2] when valid
    valid = (dx >= 0) & (dx <= 2)
    dx_c = jnp.clip(dx, 0, 2)
    wb = w_hwio[:, dx_c, :, :]                  # (3, W, W, Cin, Cout)
    wb = jnp.where(valid[None, :, :, None, None], wb, 0.0)
    wb = jnp.transpose(wb, (0, 1, 3, 2, 4))     # (3, W, Cin, W, Cout)
    return wb.reshape(3 * W * Cin, W * Cout)


def _per_image_vmem_bytes(H, K1, WCout):
    """Full dynamic VMEM working set per image per grid step."""
    return (2 * H * K1 * 2          # bf16 input block, double-buffered
            + 2 * H * WCout * 2     # bf16 output block, double-buffered
            + H * 3 * K1 * 2        # bf16 fused-K LHS scratch
            + H * 3 * K1 * 2        # bf16 LHS value materialized for the dot
            + H * WCout * 4)        # f32 accumulator


def _pick_block(N, per_img_bytes, *, target_bytes=6 << 20, min_steps=4):
    """Images per grid step: as fat as the VMEM budget allows, but keep at
    least `min_steps` grid steps for DMA/compute overlap and (on v7x) load
    balance across both TensorCores.  Remainders are handled by padding N."""
    nb = max(1, target_bytes // max(per_img_bytes, 1))
    nb = min(nb, max(1, pl.cdiv(N, min_steps)))
    return int(min(nb, N))


def spike_conv2d(x, w_hwio, bias, *, out_dtype=jnp.bfloat16):
    """SpikeModule(nn.Conv2d(Cin, Cout, 3, padding=1)) forward.

    x      : (B, T, Cin, H, W)  float32 (NCHW per frame, PyTorch convention)
    w_hwio : (3, 3, Cin, Cout)  float32
    bias   : (Cout,)            float32
    returns: (B, T, Cout, H, W) in x.dtype
    """
    B, T, Cin, H, W = x.shape
    Cout = w_hwio.shape[-1]
    N = B * T
    K1 = W * Cin
    WCout = W * Cout

    # --- glue: fold time into batch, NCHW -> NHWC, fuse (W, Cin) on lanes ---
    # (no jnp.pad: W border lives in the banded weights, H border in-kernel)
    x_bf = x.astype(jnp.bfloat16).reshape(N, Cin, H, W)   # cast first: half bytes
    x_flat = jnp.transpose(x_bf, (0, 2, 3, 1)).reshape(N, H, K1)

    wb = _banded_weights_fused(w_hwio, W).astype(jnp.bfloat16)   # (3*K1, WCout)
    b_tiled = jnp.tile(bias.astype(jnp.float32), W).reshape(1, WCout)

    per_img = _per_image_vmem_bytes(H, K1, WCout)
    Nb = _pick_block(N, per_img)
    grid_n = pl.cdiv(N, Nb)
    N_pad = grid_n * Nb
    if N_pad != N:                       # remainder block: pad, slice off later
        x_flat = jnp.pad(x_flat, ((0, N_pad - N), (0, 0), (0, 0)))

    # Explicit VMEM budget: dynamic working set + (double-buffered) weight and
    # bias blocks + headroom, clamped to the smallest default scoped limit.
    step_bytes = Nb * per_img + 2 * (wb.size * 2 + WCout * 4)
    vmem_limit = int(min(32 << 20, max(16 << 20, step_bytes + (4 << 20))))

    kernel = functools.partial(_conv3x3_kernel, Nb=Nb, H=H, K1=K1, WCout=WCout)

    out = pl.pallas_call(
        kernel,
        out_shape=jax.ShapeDtypeStruct((N_pad, H, WCout), out_dtype),
        grid_spec=pltpu.PrefetchScalarGridSpec(
            num_scalar_prefetch=0,
            grid=(grid_n,),
            in_specs=[
                pl.BlockSpec((Nb, H, K1), lambda g: (g, 0, 0)),
                # Weight / bias: constant index map -> stays resident; block is
                # tiny (~100 KB even double-buffered) so no Buffered(1) needed.
                pl.BlockSpec((3 * K1, WCout), lambda g: (0, 0)),
                pl.BlockSpec((1, WCout), lambda g: (0, 0)),
            ],
            out_specs=pl.BlockSpec((Nb, H, WCout), lambda g: (g, 0, 0)),
            scratch_shapes=[pltpu.VMEM((Nb, H, 3 * K1), jnp.bfloat16)],
        ),
        compiler_params=pltpu.CompilerParams(
            dimension_semantics=("parallel",),
            vmem_limit_bytes=vmem_limit,
        ),
    )(x_flat, wb, b_tiled)

    # --- glue: lane-dense (N, H, W*Cout) -> NCHW, unfold batch/time ---
    out = out[:N].reshape(N, H, W, Cout)
    out = jnp.transpose(out, (0, 3, 1, 2)).astype(x.dtype)
    return out.reshape(B, T, Cout, H, W)


def _reference_conv(x, w_hwio, bias):
    """Pure-JAX reference (lax conv), same semantics as PyTorch Conv2d."""
    B, T, Cin, H, W = x.shape
    Cout = w_hwio.shape[-1]
    x2 = x.reshape(B * T, Cin, H, W)
    w_oihw = jnp.transpose(w_hwio, (3, 2, 0, 1))
    out = jax.lax.conv_general_dilated(
        x2, w_oihw, window_strides=(1, 1), padding=((1, 1), (1, 1)),
        dimension_numbers=("NCHW", "OIHW", "NCHW"),
        precision=jax.lax.Precision.HIGHEST)
    out = out + bias.reshape(1, Cout, 1, 1)
    return out.reshape(B, T, Cout, H, W)


if __name__ == "__main__":
    key = jax.random.PRNGKey(0)
    k_x, k_w, k_b = jax.random.split(key, 3)

    B, T, Cin, H, W, Cout = 2, 4, 4, 16, 16, 8   # W*Cout = 128: lane-dense out

    x = jax.random.normal(k_x, (B, T, Cin, H, W), dtype=jnp.float32)
    # Deterministic synthetic Conv2d params (HWIO layout).
    w_hwio = jax.random.normal(k_w, (3, 3, Cin, Cout), dtype=jnp.float32) * 0.1
    bias = jax.random.normal(k_b, (Cout,), dtype=jnp.float32) * 0.1

    out = jax.block_until_ready(spike_conv2d(x, w_hwio, bias))

    # Reference on bf16-rounded inputs (kernel runs the MXU in bf16 with f32
    # accumulation and writes a bf16 output, so allow ~bf16-ulp tolerance).
    x_r = x.astype(jnp.bfloat16).astype(jnp.float32)
    w_r = w_hwio.astype(jnp.bfloat16).astype(jnp.float32)
    ref = _reference_conv(x_r, w_r, bias)

    assert out.shape == (B, T, Cout, H, W)
    assert jnp.allclose(out, ref, atol=2e-2, rtol=2e-2), float(
        jnp.max(jnp.abs(out - ref)))

    print("KERNEL_OK")
</pallas_src>

<mosaic_0001>
module attributes {stable_mosaic.version = 11 : i64} {
  func.func @_conv3x3_kernel(%arg0: i32, %arg1: memref<2x16x64xbf16, #tpu.memory_space<vmem>>, %arg2: memref<192x128xbf16, #tpu.memory_space<vmem>>, %arg3: memref<1x128xf32, #tpu.memory_space<vmem>>, %arg4: memref<2x16x128xbf16, #tpu.memory_space<vmem>>, %arg5: memref<2x16x192xbf16, #tpu.memory_space<vmem>>) attributes {dimension_semantics = [#tpu.dimension_semantics<parallel>], iteration_bounds = array<i64: 4>, scalar_prefetch = 0 : i64, scratch_operands = 1 : i64, tpu.core_type = #tpu.core_type<tc>, window_params = [{transform_indices = @transform_0, window_bounds = array<i64: 2, 16, 64>}, {pipeline_mode = #tpu.pipeline_mode<synchronous>, transform_indices = @transform_1, window_bounds = array<i64: 192, 128>}, {pipeline_mode = #tpu.pipeline_mode<synchronous>, transform_indices = @transform_2, window_bounds = array<i64: 1, 128>}, {transform_indices = @transform_3, window_bounds = array<i64: 2, 16, 128>}]} {
    %cst = arith.constant 0.000000e+00 : bf16
    %0 = vector.broadcast %cst : bf16 to vector<2x1x64xbf16>
    %c0 = arith.constant 0 : index
    %c0_0 = arith.constant 0 : index
    %c0_1 = arith.constant 0 : index
    %1 = vector.load %arg1[%c0, %c0_0, %c0_1] : memref<2x16x64xbf16, #tpu.memory_space<vmem>>, vector<2x16x64xbf16>
    %c0_2 = arith.constant 0 : index
    %c0_3 = arith.constant 0 : index
    %c64 = arith.constant 64 : index
    %2 = vector.load %arg5[%c0_2, %c0_3, %c64] : memref<2x16x192xbf16, #tpu.memory_space<vmem>>, vector<2x16x64xbf16>
    tpu.vector_store %arg5[%c0_2, %c0_3, %c64], %1 {strides = array<i32>} : memref<2x16x192xbf16, #tpu.memory_space<vmem>>, vector<2x16x64xbf16>,
    %c0_4 = arith.constant 0 : index
    %c0_5 = arith.constant 0 : index
    %c0_6 = arith.constant 0 : index
    %3 = vector.load %arg5[%c0_4, %c0_5, %c0_6] : memref<2x16x192xbf16, #tpu.memory_space<vmem>>, vector<2x1x64xbf16>
    tpu.vector_store %arg5[%c0_4, %c0_5, %c0_6], %0 {strides = array<i32>} : memref<2x16x192xbf16, #tpu.memory_space<vmem>>, vector<2x1x64xbf16>,
    %c0_7 = arith.constant 0 : index
    %c0_8 = arith.constant 0 : index
    %c0_9 = arith.constant 0 : index
    %4 = vector.load %arg1[%c0_7, %c0_8, %c0_9] : memref<2x16x64xbf16, #tpu.memory_space<vmem>>, vector<2x15x64xbf16>
    %c0_10 = arith.constant 0 : index
    %c1 = arith.constant 1 : index
    %c0_11 = arith.constant 0 : index
    %5 = vector.load %arg5[%c0_10, %c1, %c0_11] : memref<2x16x192xbf16, #tpu.memory_space<vmem>>, vector<2x15x64xbf16>
    tpu.vector_store %arg5[%c0_10, %c1, %c0_11], %4 {strides = array<i32>} : memref<2x16x192xbf16, #tpu.memory_space<vmem>>, vector<2x15x64xbf16>,
    %c0_12 = arith.constant 0 : index
    %c1_13 = arith.constant 1 : index
    %c0_14 = arith.constant 0 : index
    %6 = vector.load %arg1[%c0_12, %c1_13, %c0_14] : memref<2x16x64xbf16, #tpu.memory_space<vmem>>, vector<2x15x64xbf16>
    %c0_15 = arith.constant 0 : index
    %c0_16 = arith.constant 0 : index
    %c128 = arith.constant 128 : index
    %7 = vector.load %arg5[%c0_15, %c0_16, %c128] : memref<2x16x192xbf16, #tpu.memory_space<vmem>>, vector<2x15x64xbf16>
    tpu.vector_store %arg5[%c0_15, %c0_16, %c128], %6 {strides = array<i32>} : memref<2x16x192xbf16, #tpu.memory_space<vmem>>, vector<2x15x64xbf16>,
    %c0_17 = arith.constant 0 : index
    %c15 = arith.constant 15 : index
    %c128_18 = arith.constant 128 : index
    %8 = vector.load %arg5[%c0_17, %c15, %c128_18] : memref<2x16x192xbf16, #tpu.memory_space<vmem>>, vector<2x1x64xbf16>
    tpu.vector_store %arg5[%c0_17, %c15, %c128_18], %0 {strides = array<i32>} : memref<2x16x192xbf16, #tpu.memory_space<vmem>>, vector<2x1x64xbf16>,
    %c0_19 = arith.constant 0 : index
    %c0_20 = arith.constant 0 : index
    %c0_21 = arith.constant 0 : index
    %9 = vector.load %arg5[%c0_19, %c0_20, %c0_21] : memref<2x16x192xbf16, #tpu.memory_space<vmem>>, vector<2x16x192xbf16>
    %10 = vector.shape_cast %9 : vector<2x16x192xbf16> to vector<32x192xbf16>
    %c0_22 = arith.constant 0 : index
    %c0_23 = arith.constant 0 : index
    %11 = vector.load %arg2[%c0_22, %c0_23] : memref<192x128xbf16, #tpu.memory_space<vmem>>, vector<192x128xbf16>
    %cst_24 = arith.constant dense<0.000000e+00> : vector<32x128xf32>
    %12 = tpu.matmul %10, %11, %cst_24 {dimension_numbers = #tpu.dot_dimension_numbers<[1], [0], [0], [1], [0, 0, 1, 1], [], []>} : vector<32x192xbf16>, vector<192x128xbf16>, vector<32x128xf32> -> vector<32x128xf32>
    %c0_25 = arith.constant 0 : index
    %c0_26 = arith.constant 0 : index
    %13 = vector.load %arg3[%c0_25, %c0_26] : memref<1x128xf32, #tpu.memory_space<vmem>>, vector<1x128xf32>
    %14 = vector.broadcast %13 : vector<1x128xf32> to vector<32x128xf32>
    %15 = arith.addf %12, %14 : vector<32x128xf32>
    %16 = vector.shape_cast %15 : vector<32x128xf32> to vector<2x16x128xf32>
    %17 = arith.truncf %16 : vector<2x16x128xf32> to vector<2x16x128xbf16>
    %c0_27 = arith.constant 0 : index
    %c0_28 = arith.constant 0 : index
    %c0_29 = arith.constant 0 : index
    %18 = vector.load %arg4[%c0_27, %c0_28, %c0_29] : memref<2x16x128xbf16, #tpu.memory_space<vmem>>, vector<2x16x128xbf16>
    tpu.vector_store %arg4[%c0_27, %c0_28, %c0_29], %17 {strides = array<i32>} : memref<2x16x128xbf16, #tpu.memory_space<vmem>>, vector<2x16x128xbf16>,
    return
  }
  func.func @transform_0(%arg0: i32) -> (i32, i32, i32) {
    %c0_i32 = arith.constant 0 : i32
    %c0_i32_0 = arith.constant 0 : i32
    %c0_i32_1 = arith.constant 0 : i32
    return %arg0, %c0_i32, %c0_i32_0 : i32, i32, i32
  }
  func.func @transform_1(%arg0: i32) -> (i32, i32) {
    %c0_i32 = arith.constant 0 : i32
    %c0_i32_0 = arith.constant 0 : i32
    %c0_i32_1 = arith.constant 0 : i32
    return %c0_i32, %c0_i32_0 : i32, i32
  }
  func.func @transform_2(%arg0: i32) -> (i32, i32) {
    %c0_i32 = arith.constant 0 : i32
    %c0_i32_0 = arith.constant 0 : i32
    %c0_i32_1 = arith.constant 0 : i32
    return %c0_i32, %c0_i32_0 : i32, i32
  }
  func.func @transform_3(%arg0: i32) -> (i32, i32, i32) {
    %c0_i32 = arith.constant 0 : i32
    %c0_i32_0 = arith.constant 0 : i32
    %c0_i32_1 = arith.constant 0 : i32
    return %arg0, %c0_i32, %c0_i32_0 : i32, i32, i32
  }
}

</mosaic_0001>

<bundles_post_ra>
// kernel: tpu_custom_call.1
= control target key start
LH: loop header
LB: loop body
LE: loop exit
PB: predicated region body
PF: predicated region fallthrough
CT: control target
= control target key end

     0   :  { %8 = vsyncpa [#allocation4], 0  ;;  %s1176_s0 = inlined_call_operand.hbm [shape: bf16[8,16,64], index: 0, kind: input, shape index: {}]   ;;  %s1177_s1 = inlined_call_operand.hbm [shape: bf16[192,128], index: 1, kind: input, shape index: {}]   ;;  %s1178_s2 = inlined_call_operand.vmem [shape: f32[1,128], index: 2, kind: input, shape index: {}]   ;;  %s1179_s3 = inlined_call_operand.hbm [shape: bf16[8,16,128], index: 3, kind: output, shape index: {}]  }
   0x1   :  { %10 = vsyncpa [#allocation4 + $0x1], 0 }
   0x2   :  { %11 = vsyncpa [#allocation7], 0 }
   0x3   :  { %12 = vsyncpa [#allocation5], 0 }
   0x4   :  { %14 = vsyncpa [#allocation5 + $0x1], 0  ;;  %s931_s12 = smov 0   ;;  %s933_s13 = smov 0  }
   0x5   :  { %s935_s14 = smov 0   ;;  %s937_s15 = smov 0  }
   0x6 LB: > { %s952_s16 = sadd.s32 4294967295, %s901_s15   ;;  %s607_s17 = sadd.s32 4294967294, %s901_s15   ;;  %s901_s15 = sphi %s937_s15, %s1198_s15   ;;  %s897_s14 = sphi %s935_s14, %s1197_s14   ;;  %s893_s13 = sphi %s933_s13, %s1196_s13   ;;  %s889_s12 = sphi %s931_s12, %s1195_s12  }
   0x7   : > { %p40_p0 = scmp.ne.s32.totalorder %s893_s13, %s889_s12  ;;  %p1180_p1 = scmp.eq.s32.totalorder %s952_s16, 0 }
   0x8   : > { %p112_p3 = scmp.eq.s32.totalorder %s607_s17, 3  ;;  %p608_p5 = scmp.ge.s32.totalorder %s901_s15, 1 }
   0x9   : > { %p961_p4 = por %p1180_p1, %p40_p0  ;;  %p119_p7 = scmp.lt.s32.totalorder %s901_s15, 5 }
   0xa   : > { %p966_p6 = por %p112_p3, %p40_p0  ;;  %s903_s21 = smov [#allocation6]  }
   0xb   : > { %s1183_s18 = scalar_select %p961_p4, 1, 0 }
   0xc   : > { %s1184_s19 = scalar_select %p966_p6, 1, 0 }
   0xd   : > { %p971_p8 = pnand %p608_p5, %p119_p7  ;;  %s131_s22 = sshll.u32 %s903_s21, 4  ;;  %s132_s22 = int_to_ptr.vmem [resolvable:$true] %s131_s22 }
   0xe   : > { %s984_s24 = sadd.s32 1, %s901_s15   ;;  %s27_s25 = sadd.s32 1, %s897_s14 }
   0xf   : > { %s1185_s20 = scalar_select %p971_p8, 1, 0 }
  0x10   : > { %p701_p9 = pneg %p971_p8  ;;  %s24_s26 = ssub.s32 %s901_s15, %s984_s24 }
  0x11   : > { %s773_s29 = scalar_lea.hbm %s1177_s1, 1536 }
  0x12   : > { %p979_p10 = pnand %p701_p9, %p1180_p1  ;;  %p774_p11 = scmp.ne.s32.totalorder %s1177_s1, %s773_s29 }
  0x13   : > { %p780_p3 = scmp.lt.u32.totalorder %s773_s29, %s1177_s1 }
  0x14   : > { %p775_p12 = pneg %p979_p10 }
  0x16   : > { %p776_p13 = pnand %p775_p12, %p774_p11 }
  0x18   : > { %p777_p0 = pneg %p776_p13 }
  0x1a   : > { %p782_p5 = pnand %p780_p3, %p777_p0 }
  0x1c   : > { %785 = shalt.err (!%p782_p5)
}
  0x1d   : > { %s786_s7 = scalar_lea.vmem %s132_s22, 1536  ;;  %p794_p2 = scmp.lt.s32.totalorder %s132_s22, %s132_s22 }
  0x1e   : > { %p787_p7 = scmp.ne.s32.totalorder %s132_s22, %s786_s7  ;;  %p795_p6 = scmp.lt.s32.totalorder %s786_s7, %s786_s7 }
  0x20   : > { %p789_p9 = pnand %p787_p7, %p775_p12  ;;  %p796_p4 = por %p795_p6, %p794_p2 }
  0x22   : > { %p790_p1 = pneg %p789_p9 }
  0x24   : > { %p797_p8 = pnand %p796_p4, %p790_p1 }
  0x26   : > { %800 = shalt.err (!%p797_p8)
}
  0x27   : > { %s904_s8 = smov 64   ;;  %s905_s9 = smov 4  }
  0x28   : > { %704 = dma.hbm_to_vmem [thread:$0]  (!%p979_p10), %s1177_s1, 1536, %s132_s22, [#allocation7], %s904_s8, %s904_s8, %s905_s9  }
  0x29   : > { %p25_p1 = scmp.eq.s32.totalorder %s24_s26, 0  ;;  %p34_p2 = scmp.ne.s32.totalorder %s897_s14, %s893_s13 }
  0x2a   : > { %p35_p4 = scmp.eq.s32.totalorder %s901_s15, 0  ;;  %p714_p6 = scmp.lt.s32.totalorder %s901_s15, 4 }
  0x2b   : > { %s1013_s17 = scalar_select %p25_p1, %s897_s14, %s27_s25  }
  0x2c   : > { %p36_p8 = por %p35_p4, %p34_p2  ;;  %p1187_p11 = scmp.eq.s32.totalorder %s952_s16, 3 }
  0x2d   : > { %s148_s23 = sand.u32 1, %s897_s14   ;;  %s651_s27 = sshll.u32 %s901_s15, 8 }
  0x2e   : > { %p1017_p12 = por %p1187_p11, %p34_p2  ;;  %s611_s28 = sshll.u32 %s148_s23, 4 }
  0x2f   : > { %s1026_s4 = scalar_lea.hbm %s1176_s0, %s651_s27  ;;  %s152_s22 = scalar_lea.vmem [#allocation3], %s611_s28 }
  0x30   : > { %s160_s25 = sshll.u32 %s152_s22, 4  ;;  %p1028_p10 = pnand %p714_p6, %p36_p8  ;;  %s1032_s25 = int_to_ptr.vmem [resolvable:$true] %s160_s25 }
  0x31   : > { %s1034_s5 = scalar_lea.sflag [#allocation4], %s148_s23  ;;  %s801_s6 = scalar_lea.hbm %s1026_s4, 256 }
  0x32   : > { %p802_p13 = scmp.ne.s32.totalorder %s1026_s4, %s801_s6  ;;  %p803_p0 = pneg %p1028_p10 }
  0x33   : > { %s806_s11 = scalar_lea.hbm %s1176_s0, 1024  ;;  %p807_p7 = scmp.lt.u32.totalorder %s1026_s4, %s1176_s0 }
  0x34   : > { %p804_p3 = pnand %p803_p0, %p802_p13  ;;  %p808_p9 = scmp.lt.u32.totalorder %s806_s11, %s801_s6 }
  0x35   : > { %p810_p2 = scmp.lt.u32.totalorder %s801_s6, %s1026_s4 }
  0x36   : > { %p805_p5 = pneg %p804_p3  ;;  %p809_p1 = por %p808_p9, %p807_p7 }
  0x38   : > { %p811_p4 = por %p810_p2, %p809_p1 }
  0x3a   : > { %p812_p6 = pnand %p811_p4, %p805_p5 }
  0x3c   : > { %815 = shalt.err (!%p812_p6)
}
  0x3d   : > { %s816_s23 = scalar_lea.vmem %s1032_s25, 256  ;;  %s906_s29 = smov [#allocation3]  }
  0x3e   : > { %p817_p8 = scmp.ne.s32.totalorder %s1032_s25, %s816_s23  ;;  %s821_s30 = sshll.u32 %s906_s29, 4  ;;  %s822_s30 = int_to_ptr.vmem [resolvable:$false] %s821_s30 }
  0x3f   : > { %s823_s22 = scalar_lea.vmem %s822_s30, 512  ;;  %p824_p3 = scmp.lt.s32.totalorder %s1032_s25, %s822_s30 }
  0x40   : > { %p819_p11 = pnand %p817_p8, %p803_p0  ;;  %p825_p7 = scmp.lt.s32.totalorder %s823_s22, %s816_s23 }
  0x42   : > { %p820_p13 = pneg %p819_p11  ;;  %p826_p9 = por %p825_p7, %p824_p3 }
  0x44   : > { %p827_p1 = pnand %p826_p9, %p820_p13 }
  0x46   : > { %830 = shalt.err (!%p827_p1)
}
  0x47   : > { %708 = dma.hbm_to_vmem [thread:$0]  (!%p1028_p10), %s1026_s4, 256, %s1032_s25, %s1034_s5, %s904_s8, %s904_s8, %s905_s9  }
  0x48   : > { %p1190_p0 = scmp.ne.s32.totalorder %s1185_s20, 0 }
  0x49   : > { %s1068_s6 = sand.u32 (!%p1190_p0), 1, %s893_s13   ;;  %p1191_p5 = scmp.ne.s32.totalorder (!%p1190_p0), %s1183_s18, 0 }
  0x4a   : > { %172 = sbr.rel (%p1190_p0) target bundleno = 457 (0x1c9), region = 32  ;;  %s616_s7 = sshll.u32 (!%p1190_p0), %s1068_s6, 4 }
  0x4b   : > { %s175_s10 = scalar_lea.sflag (!%p1190_p0), [#allocation4], %s1068_s6  ;;  %s1074_s26 = scalar_lea.vmem (!%p1190_p0), [#allocation3], %s616_s7 }
  0x51   : > { %876 = dma.done.wait (%p1191_p5), %s175_s10, 256  }
  0x52   : > { %878 = vsyncadd (%p1191_p5), %s175_s10, 4294967040  ;;  %p1192_p10 = scmp.eq.s32.totalorder %s952_s16, 0 }
  0x54   : > { %880 = dma.done.wait (%p1192_p10), [#allocation7], 1536   ;;  %p1193_p2 = pmov %p1192_p10 }
  0x55   : > { %v907_v0 = vmov 0   ;;  %v755_v1 = vld [vmem:[%s1074_s26] sm:$0xff]   ;;  %v756_v2 = vld [vmem:[%s1074_s26 + $0x8] sm:$0xff]   ;;  %s908_s20 = smov 64   ;;  %vm270_vm0 = vcmask 523264   ;;  %vm317_vm3 = vcmask 523271  }
  0x56   : > { %882 = vsyncadd (%p1193_p2), [#allocation7], 4294965760  ;;  %440 = vmatprep.subr.bf16.mxu0 %v907_v0  ;;  %669 = vmatprep.subr.bf16.mxu1 %v907_v0  ;;  %v757_v3 = vld [vmem:[#allocation6] sm:$0xff]   ;;  %v758_v4 = vld [vmem:[#allocation6 + $0x8] sm:$0xff]   ;;  %vm309_vm1 = vsmask.f32 7424 }
  0x57   : > { %222 = vrot.lane.b32.xlu0 %v755_v1, %s908_s20  ;;  %441 = vmatpush1.bf16.msra.mxu0 %v757_v3  ;;  %v759_v5 = vld [vmem:[#allocation6 + $0x10] sm:$0xff]   ;;  %v760_v6 = vld [vmem:[#allocation6 + $0x18] sm:$0xff]   ;;  %v761_v7 = vld [vmem:[#allocation6 + $0x20] sm:$0xff]   ;;  %vm318_vm4 = vsmask.f32 7966  ;;  %vm228_vm6 = vcmask 1048064  }
  0x58   : > { %681 = vmatpush1.bf16.msra.mxu1 %v757_v3  ;;  %442 = vmatprep.subr.bf16.mxu0 %v907_v0  ;;  %v771_v8 = vld [vmem:[%s1074_s26] sm:$0xff]   ;;  %v772_v9 = vld [vmem:[%s1074_s26 + $0x8] sm:$0xff]   ;;  %vm310_vm2 = vmand %vm270_vm0, %vm309_vm1  ;;  %vm231_vm7 = vcmask 516096   ;;  %vm232_vm8 = vsmask.f32 256  ;;  %s204_s9 = scalar_lea.vmem [#allocation8], %s616_s7 }
  0x59   : > { %670 = vmatprep.subr.bf16.mxu1 %v907_v0  ;;  %v762_v10 = vld [vmem:[#allocation6 + $0x28] sm:$0xff]   ;;  %v294_v11 = vshrl.u32 %v771_v8, 16  ;;  %v296_v12 = vshll.u32 %v771_v8, 16  ;;  %v301_v13 = vshrl.u32 %v772_v9, 16  ;;  %v303_v14 = vshll.u32 %v772_v9, 16  ;;  %v314_v18 = vld [vmem:[#allocation2 + $0x18] sm:$0xff]  ;;  %vm319_vm5 = vmand %vm317_vm3, %vm318_vm4 }
  0x5a   : > { %v311_v17 = vld [vmem:[#allocation2 + $0x8] sm:$0xff]  ;;  %v763_v19 = vld [vmem:[#allocation6 + $0x30] sm:$0xff]   ;;  %v764_v24 = vld [vmem:[#allocation6 + $0x38] sm:$0xff]   ;;  %vm271_vm10 = vsmask.f32 7938  ;;  %s524_s4 = sshll.u32 %s204_s9, 4  ;;  %s1126_s4 = int_to_ptr.vmem [resolvable:$true] %s524_s4 }
  0x5b   : > { %224 = vrot.lane.b32.xlu0 %v756_v2, %s908_s20  ;;  %443 = vmatpush1.bf16.msra.mxu0 %v758_v4  ;;  %v298_v15 = vrot.slane %v296_v12, 1  ;;  %v305_v16 = vrot.slane %v303_v14, 1  ;;  %v765_v25 = vld [vmem:[#allocation6 + $0x40] sm:$0xff]   ;;  %v766_v30 = vld [vmem:[#allocation6 + $0x48] sm:$0xff]   ;;  %v767_v31 = vld [vmem:[#allocation6 + $0x50] sm:$0xff]   ;;  %s657_s25 = sshll.u32 %s952_s16, 8 }
  0x5c   : > { %682 = vmatpush1.bf16.msra.mxu1 %v758_v4  ;;  %444 = vmatprep.subr.bf16.mxu0 %v907_v0  ;;  %v768_v34 = vld [vmem:[#allocation6 + $0x58] sm:$0xff]   ;;  %v769_v36 = vld [vmem:[%s1074_s26] sm:$0xff]   ;;  %vm233_vm9 = vmand %vm231_vm7, %vm232_vm8  ;;  %s1131_s27 = scalar_lea.hbm %s1179_s3, %s657_s25  ;;  %s510_s28 = scalar_lea.sflag [#allocation5], %s1068_s6 }
  0x5d   : > { %671 = vmatprep.subr.bf16.mxu1 %v907_v0  ;;  %v299_v20 = vor.u32 %v298_v15, %v294_v11  ;;  %v306_v21 = vor.u32 %v305_v16, %v301_v13  ;;  %v770_v38 = vld [vmem:[%s1074_s26 + $0x8] sm:$0xff]   ;;  %v255_v39 = vshrl.u32 %v769_v36, 16  ;;  %v258_v43 = vshll.u32 %v769_v36, 16  ;;  %vm272_vm11 = vmand %vm270_vm0, %vm271_vm10  ;;  %v625_v55 = vld [vmem:[%s1178_s2] ss:$0 sm:$0xff]  ;;  %s831_s23 = scalar_lea.vmem %s1126_s4, 256 }
  0x5e   : > { %v262_v44 = vshrl.u32 %v770_v38, 16  ;;  %v265_v49 = vshll.u32 %v770_v38, 16  ;;  %p832_p4 = scmp.ne.s32.totalorder %s1126_s4, %s831_s23  ;;  %s909_s16 = smov [#allocation8]  }
  0x5f   : > { %445 = vmatpush1.bf16.msra.mxu0 %v759_v5  ;;  %v312_v22 = vsel %vm310_vm2, %v299_v20, %v311_v17  ;;  %v315_v23 = vsel %vm310_vm2, %v306_v21, %v314_v18  ;;  %v257_v42 = vrot.slane %v255_v39, 7  ;;  %s835_s29 = sshll.u32 %s909_s16, 4  ;;  %s836_s29 = int_to_ptr.vmem [resolvable:$false] %s835_s29 }
  0x60   : > { %683 = vmatpush1.bf16.msra.mxu1 %v759_v5  ;;  %446 = vmatprep.subr.bf16.mxu0 %v907_v0  ;;  %313 = vst [vmem:[#allocation2 + $0x8] sm:$0xff] %v312_v22  ;;  %316 = vst [vmem:[#allocation2 + $0x18] sm:$0xff] %v315_v23  ;;  %v264_v48 = vrot.slane %v262_v44, 7  ;;  %p833_p6 = pnand %p832_p4, %p1017_p12  ;;  %s837_s30 = scalar_lea.vmem %s836_s29, 512 }
  0x61   : > { %672 = vmatprep.subr.bf16.mxu1 %v907_v0  ;;  %v260_v47 = vor.u32 %v258_v43, %v257_v42  ;;  %p838_p11 = scmp.lt.s32.totalorder %s1126_s4, %s836_s29  ;;  %p839_p13 = scmp.lt.s32.totalorder %s837_s30, %s831_s23 }
  0x62   : > { %v267_v51 = vor.u32 %v265_v49, %v264_v48  ;;  %p834_p8 = pneg %p833_p6 }
  0x63   : > { %447 = vmatpush1.bf16.msra.mxu0 %v760_v6  ;;  %p840_p3 = por %p839_p13, %p838_p11 }
  0x64   : > { %684 = vmatpush1.bf16.msra.mxu1 %v760_v6  ;;  %448 = vmatprep.subr.bf16.mxu0 %v907_v0 }
  0x65   : > { %673 = vmatprep.subr.bf16.mxu1 %v907_v0  ;;  %p841_p7 = pnand %p840_p3, %p834_p8 }
  0x67   : > { %449 = vmatpush1.bf16.msra.mxu0 %v761_v7  ;;  %v320_v26 = vld [vmem:[#allocation2 + $0x8] sm:$0x80]  ;;  %v323_v27 = vld [vmem:[#allocation2 + $0x18] sm:$0x80] }
  0x68   : > { %685 = vmatpush1.bf16.msra.mxu1 %v761_v7  ;;  %450 = vmatprep.subr.bf16.mxu0 %v907_v0  ;;  %v321_v28 = vsel %vm319_vm5, 0, %v320_v26  ;;  %v324_v29 = vsel %vm319_vm5, 0, %v323_v27 }
  0x69   : > { %674 = vmatprep.subr.bf16.mxu1 %v907_v0  ;;  %322 = vst [vmem:[#allocation2 + $0x8] sm:$0x80] %v321_v28  ;;  %325 = vst [vmem:[#allocation2 + $0x18] sm:$0x80] %v324_v29 }
  0x6b   : > { %451 = vmatpush1.bf16.msra.mxu0 %v762_v10 }
  0x6c   : > { %686 = vmatpush1.bf16.msra.mxu1 %v762_v10  ;;  %452 = vmatprep.subr.bf16.mxu0 %v907_v0 }
  0x6d   : > { %675 = vmatprep.subr.bf16.mxu1 %v907_v0 }
  0x6f   : > { %453 = vmatpush1.bf16.msra.mxu0 %v763_v19 }
  0x70   : > { %687 = vmatpush1.bf16.msra.mxu1 %v763_v19  ;;  %454 = vmatprep.subr.bf16.mxu0 %v907_v0  ;;  %v327_v32 = vld [vmem:[#allocation2 + $0x8] sm:$0xff]  ;;  %v329_v33 = vld [vmem:[#allocation2 + $0x18] sm:$0xff] }
  0x71   : > { %676 = vmatprep.subr.bf16.mxu1 %v907_v0  ;;  %638 = vmatprep.mubr.msk.bf16.mxu0 %vm270_vm0, %v327_v32 }
  0x72   : > { %639 = vmatprep.mubr.msk.bf16.mxu1 %vm270_vm0, %v329_v33 }
  0x73   : > { %455 = vmatpush1.bf16.msra.mxu0 %v764_v24 }
  0x74   : > { %688 = vmatpush1.bf16.msra.mxu1 %v764_v24  ;;  %456 = vmatprep.subr.bf16.mxu0 %v907_v0 }
  0x75   : > { %677 = vmatprep.subr.bf16.mxu1 %v907_v0 }
  0x77   : > { %457 = vmatpush1.bf16.msra.mxu0 %v765_v25 }
  0x78   : > { %689 = vmatpush1.bf16.msra.mxu1 %v765_v25  ;;  %458 = vmatprep.subr.bf16.mxu0 %v907_v0 }
  0x79   : > { %678 = vmatprep.subr.bf16.mxu1 %v907_v0 }
  0x7b   : > { %459 = vmatpush1.bf16.msra.mxu0 %v766_v30 }
  0x7c   : > { %690 = vmatpush1.bf16.msra.mxu1 %v766_v30  ;;  %460 = vmatprep.subr.bf16.mxu0 %v907_v0 }
  0x7d   : > { %679 = vmatprep.subr.bf16.mxu1 %v907_v0 }
  0x7f   : > { %461 = vmatpush1.bf16.msra.mxu0 %v767_v31 }
  0x80   : > { %691 = vmatpush1.bf16.msra.mxu1 %v767_v31  ;;  %462 = vmatprep.subr.bf16.mxu0 %v907_v0 }
  0x81   : > { %680 = vmatprep.subr.bf16.mxu1 %v907_v0 }
  0x83   : > { %463 = vmatpush1.bf16.msra.mxu0 %v768_v34 }
  0x84   : > { %692 = vmatpush1.bf16.msra.mxu1 %v768_v34 }
  0xc9   : > { %v223_v35 = vpop.permute.xlu0 %222 }
  0xca   : > { %229 = vst.msk [vmem:[#allocation2] sm:$0xff] %vm228_vm6, %v223_v35 }
  0xcd   : > { %v225_v37 = vpop.permute.xlu0 %224 }
  0xce   : > { %230 = vst.msk [vmem:[#allocation2 + $0x10] sm:$0xff] %vm228_vm6, %v225_v37 }
  0xd1   : > { %v234_v40 = vld [vmem:[#allocation2] sm:$0x1] }
  0xd2   : > { %v235_v41 = vsel %vm233_vm9, 0, %v234_v40 }
  0xd3   : > { %236 = vst [vmem:[#allocation2] sm:$0x1] %v235_v41 }
  0xd5   : > { %v237_v45 = vld [vmem:[#allocation2 + $0x10] sm:$0x1] }
  0xd6   : > { %v238_v46 = vsel %vm233_vm9, 0, %v237_v45 }
  0xd7   : > { %239 = vst [vmem:[#allocation2 + $0x10] sm:$0x1] %v238_v46 }
  0xda   : > { %v273_v50 = vld [vmem:[#allocation2] sm:$0xff] }
  0xdb   : > { %v274_v52 = vsel %vm272_vm11, %v260_v47, %v273_v50 }
  0xdc   : > { %275 = vst [vmem:[#allocation2] sm:$0xff] %v274_v52  ;;  %473 = vmatmul.mubr.bf16.vlgmr.msra.gmra.mrb[0].mxu0 %v274_v52 }
  0xde   : > { %v276_v53 = vld [vmem:[#allocation2 + $0x10] sm:$0xff] }
  0xdf   : > { %v277_v54 = vsel %vm272_vm11, %v267_v51, %v276_v53 }
  0xe0   : > { %278 = vst [vmem:[#allocation2 + $0x10] sm:$0xff] %v277_v54  ;;  %481 = vmatmul.mubr.bf16.vlgmr.msra.gmra.mrb[0].mxu1 %v277_v54 }
 0x1af   : > { %v474_v56 = vpop.f32.mrb[0].mxu0 }
 0x1b0   : > { %v476_v57 = vpop.f32.mrb[1].mxu0  ;;  %v475_v59 = vadd.f32 %v625_v55, %v474_v56 }
 0x1b1   : > { %v477_v58 = vpop.f32.mrb[2].mxu0 }
 0x1b2   : > { %v478_v60 = vadd.f32 %v625_v55, %v477_v58  ;;  %v479_v61 = vpop.f32.mrb[3].mxu0 }
 0x1b3   : > { %v482_v62 = vpop.f32.mrb[0].mxu1 }
 0x1b4   : > { %v661_v63 = vpack.c.bf16 %v478_v60, %v475_v59  ;;  %v484_v0 = vpop.f32.mrb[1].mxu1  ;;  %v483_v2 = vadd.f32 %v625_v55, %v482_v62 }
 0x1b5   : > { %v485_v1 = vpop.f32.mrb[2].mxu1 }
 0x1b6   : > { %662 = vst [vmem:[%s204_s9] sm:$0xff] %v661_v63   ;;  %v486_v3 = vadd.f32 %v625_v55, %v485_v1  ;;  %v487_v4 = vpop.f32.mrb[3].mxu1 }
 0x1b8   : > { %v666_v5 = vpack.c.bf16 %v486_v3, %v483_v2 }
 0x1ba   : > { %668 = vst [vmem:[%s204_s9 + $0x8] sm:$0xff] %v666_v5  }
 0x1bb   : > { %844 = shalt.err (!%p841_p7)
}
 0x1bc   : > { %s845_s22 = scalar_lea.hbm %s1131_s27, 256  ;;  %s849_s26 = scalar_lea.hbm %s1179_s3, 1024 }
 0x1bd   : > { %p846_p9 = scmp.ne.s32.totalorder %s1131_s27, %s845_s22  ;;  %p850_p5 = scmp.lt.u32.totalorder %s1131_s27, %s1179_s3 }
 0x1be   : > { %p851_p10 = scmp.lt.u32.totalorder %s849_s26, %s845_s22  ;;  %p853_p4 = scmp.lt.u32.totalorder %s845_s22, %s1131_s27 }
 0x1bf   : > { %p847_p1 = pnand %p846_p9, %p1017_p12 }
 0x1c0   : > { %p852_p2 = por %p851_p10, %p850_p5 }
 0x1c1   : > { %p848_p0 = pneg %p847_p1 }
 0x1c2   : > { %p854_p6 = por %p853_p4, %p852_p2 }
 0x1c4   : > { %p855_p8 = pnand %p854_p6, %p848_p0 }
 0x1c6   : > { %858 = shalt.err (!%p855_p8)
}
 0x1c7   : > { %s910_s9 = smov 4  }
 0x1c8   : > { %699 = dma.vmem_to_hbm [thread:$0]  (%p1017_p12), %s1126_s4, 256, %s1131_s27, %s510_s28, %s908_s20, %s908_s20, %s910_s9  }
 0x1c9 PF: > { %p716_p11 = scmp.ge.s32.totalorder %s901_s15, 2  ;;  %s539_s25 = sand.u32 1, %s889_s12  }
 0x1ca   : > { %p1194_p13 = scmp.ne.s32.totalorder %s1184_s19, 0  ;;  %s540_s5 = scalar_lea.sflag [#allocation5], %s539_s25 }
 0x1cc   : > { %p710_p3 = pnand %p716_p11, %p1194_p13 }
 0x1ce   : > { %884 = dma.done.wait (!%p710_p3), %s540_s5, 256  }
 0x1cf   : > { %886 = vsyncadd (!%p710_p3), %s540_s5, 4294967040  ;;  %p17_p7 = scmp.ge.s32.totalorder %s984_s24, 6   ;;  %s1195_s12 = smov %s893_s13 }
 0x1d0   : > { %s1196_s13 = smov %s897_s14  ;;  %s1197_s14 = smov %s1013_s17 }
 0x1d1   : > { %s1198_s15 = smov %s984_s24  ;;  %19 = sbr.rel (!%p17_p7) target bundleno = 6 (0x6), region = 81 }
 0x1d8   :  { %545 = vsyncpa [#allocation4], 1 }
 0x1d9   :  { %547 = vsyncpa [#allocation4 + $0x1], 1 }
 0x1da   :  { %548 = vsyncpa [#allocation7], 1 }
 0x1db   :  { %549 = vsyncpa [#allocation5], 1 }
 0x1dc   :  { %551 = vsyncpa [#allocation5 + $0x1], 1 }

</bundles_post_ra>
